<compile_context>
chip_gen: v6e
topology: v6e:2x2x1
jax: 0.10.0
libtpu: 0.0.40
codegen_flags: <defaults>
</compile_context>

<pallas_src>
import functools

import jax
import jax.numpy as jnp
from jax.experimental import pallas as pl
from jax.experimental.pallas import tpu as pltpu


def _round_up(x, m):
    return ((x + m - 1) // m) * m


# -----------------------------------------------------------------------------
# Kernels
# -----------------------------------------------------------------------------
def tgnn_conv_kernel(adjn_ref, x_in_ref, wl_ref, bl_ref, wi_ref, bi_ref,
                     wh_ref, bh_ref, out_ref, x_cur_ref):
    """One TGNNconv layer.

    Grid: (D edge layers, target-node tiles).
      adjn_ref : (1, TILE, Np)  normalized transposed adjacency tile, layout (tgt, src)
      x_in_ref : (Np, Cp)       raw node features (resident)
      wl_ref   : (Cp, Hp), bl_ref: (1, Hp)       linear
      wi_ref   : (Hp, 3Hp), bi_ref: (1, 3Hp)     fused GRU input gates (r|z|n)
      wh_ref   : (Hp, 3Hp), bh_ref: (1, 3Hp)     fused GRU hidden gates (r|z|n)
      out_ref  : (Np, Hp)       output node state (resident, flushed once at the end)
      x_cur_ref: (Np, Hp)       current node state (VMEM scratch)
    """
    d = pl.program_id(0)
    t = pl.program_id(1)
    num_d = pl.num_programs(0)
    num_t = pl.num_programs(1)
    tile = adjn_ref.shape[1]
    hp = out_ref.shape[1]

    # x = self.linear(x): once, for all nodes, at the very first grid step.
    @pl.when((d == 0) & (t == 0))
    def _():
        x_cur_ref[...] = (
            jnp.dot(x_in_ref[...], wl_ref[...], preferred_element_type=jnp.float32)
            + bl_ref[...]
        )

    row0 = pl.multiple_of(t * tile, tile)

    # Mean aggregation over incoming edges for this target tile: one MXU matmul.
    a = adjn_ref[0]                                                      # [tile, Np]
    h = jnp.dot(a, x_cur_ref[...], preferred_element_type=jnp.float32)   # [tile, Hp]
    x_t = x_cur_ref[pl.ds(row0, tile), :]                                # [tile, Hp]

    # Fused GRU gates (PyTorch gate order r, z, n packed along lanes).
    gi = jnp.dot(x_t, wi_ref[...], preferred_element_type=jnp.float32) + bi_ref[...]
    gh = jnp.dot(h, wh_ref[...], preferred_element_type=jnp.float32) + bh_ref[...]
    r = jax.nn.sigmoid(gi[:, 0 * hp:1 * hp] + gh[:, 0 * hp:1 * hp])
    z = jax.nn.sigmoid(gi[:, 1 * hp:2 * hp] + gh[:, 1 * hp:2 * hp])
    n = jnp.tanh(gi[:, 2 * hp:3 * hp] + r * gh[:, 2 * hp:3 * hp])
    h_hat = (1.0 - z) * n + z * h

    # h_hat[h == 0] = x[h == 0]   (elementwise; exact zeros for isolated targets)
    new_x = jnp.where(h == 0.0, x_t, h_hat)

    # self.norm (ReLU) is applied only after the last edge layer.
    is_last_d = d == num_d - 1
    out_ref[pl.ds(row0, tile), :] = jnp.where(is_last_d, jnp.maximum(new_x, 0.0), new_x)

    # End of an edge-layer pass: commit the fully updated state for the next pass.
    @pl.when((t == num_t - 1) & (d < num_d - 1))
    def _():
        x_cur_ref[...] = out_ref[...]


def global_mean_pool_kernel(pool_ref, x_ref, out_ref):
    """pool: [Gp, Np] pre-normalized one-hot membership; x: [Np, Hp]; out: [Gp, Hp]."""
    out_ref[...] = jnp.dot(pool_ref[...], x_ref[...], preferred_element_type=jnp.float32)


# -----------------------------------------------------------------------------
# Wrappers
# -----------------------------------------------------------------------------
def _tgnn_conv(x_p, a_norm, lin, gru, *, tile):
    n_pad, cin_p = x_p.shape
    hp = lin["w"].shape[1]
    num_d = a_norm.shape[0]
    num_t = n_pad // tile

    # VMEM budget: streamed adjacency (double-buffered) + resident x / weights / state.
    vmem_bytes = 4 * (2 * tile * n_pad
                      + 2 * n_pad * cin_p
                      + 3 * n_pad * hp
                      + 2 * (cin_p * hp + 2 * hp * 3 * hp + 7 * hp))
    vmem_bytes = int(min(max(vmem_bytes + (4 << 20), 16 << 20), 48 << 20))

    return pl.pallas_call(
        tgnn_conv_kernel,
        out_shape=jax.ShapeDtypeStruct((n_pad, hp), jnp.float32),
        grid=(num_d, num_t),
        in_specs=[
            pl.BlockSpec((1, tile, n_pad), lambda d, t: (d, t, 0)),   # streamed adjacency
            pl.BlockSpec((n_pad, cin_p), lambda d, t: (0, 0)),        # resident x
            pl.BlockSpec((cin_p, hp), lambda d, t: (0, 0)),           # W_lin
            pl.BlockSpec((1, hp), lambda d, t: (0, 0)),               # b_lin
            pl.BlockSpec((hp, 3 * hp), lambda d, t: (0, 0)),          # W_i (fused r|z|n)
            pl.BlockSpec((1, 3 * hp), lambda d, t: (0, 0)),           # b_i
            pl.BlockSpec((hp, 3 * hp), lambda d, t: (0, 0)),          # W_h (fused r|z|n)
            pl.BlockSpec((1, 3 * hp), lambda d, t: (0, 0)),           # b_h
        ],
        out_specs=pl.BlockSpec((n_pad, hp), lambda d, t: (0, 0)),
        scratch_shapes=[pltpu.VMEM((n_pad, hp), jnp.float32)],
        compiler_params=pltpu.CompilerParams(
            dimension_semantics=("arbitrary", "arbitrary"),
            vmem_limit_bytes=vmem_bytes,
        ),
    )(a_norm, x_p, lin["w"], lin["b"], gru["wi"], gru["bi"], gru["wh"], gru["bh"])


def _global_mean_pool(x_p, pool):
    g_pad = pool.shape[0]
    hp = x_p.shape[1]
    return pl.pallas_call(
        global_mean_pool_kernel,
        out_shape=jax.ShapeDtypeStruct((g_pad, hp), jnp.float32),
        in_specs=[pl.BlockSpec(memory_space=pltpu.MemorySpace.VMEM)] * 2,
        out_specs=pl.BlockSpec(memory_space=pltpu.MemorySpace.VMEM),
    )(pool, x_p)


# ---- parameter padding / gate fusion (layout plumbing, done once under jit) ----
def _pad2(a, rows, cols):
    return jnp.pad(a, ((0, rows - a.shape[0]), (0, cols - a.shape[1])))


def _pad_linear(lin, cin_p, hp):
    return {"w": _pad2(lin["w"], cin_p, hp), "b": _pad2(lin["b"], 1, hp)}


def _pack_gru(gru, hp):
    wi = jnp.concatenate([_pad2(gru[k], hp, hp) for k in ("w_ir", "w_iz", "w_in")], axis=1)
    wh = jnp.concatenate([_pad2(gru[k], hp, hp) for k in ("w_hr", "w_hz", "w_hn")], axis=1)
    bi = jnp.concatenate([_pad2(gru[k], 1, hp) for k in ("b_ir", "b_iz", "b_in")], axis=1)
    bh = jnp.concatenate([_pad2(gru[k], 1, hp) for k in ("b_hr", "b_hz", "b_hn")], axis=1)
    return {"wi": wi, "bi": bi, "wh": wh, "bh": bh}


@functools.partial(jax.jit, static_argnames=("num_graphs",))
def tgnn_forward(x, offset, adj, params, *, num_graphs):
    """TGNN.forward: conv1 -> conv2 -> global_mean_pool.  (conv0 is unused in the module.)"""
    if x.ndim == 1:
        x = x[None, :]
    n, cin = x.shape
    h = params["conv1_lin"]["w"].shape[1]

    hp = _round_up(h, 128)
    cin_p = _round_up(cin, 128)
    tile = 128 if n >= 128 else _round_up(n, 8)
    n_pad = _round_up(n, tile)
    g_pad = _round_up(num_graphs, 8)

    # Normalized, transposed adjacency, shared by both conv layers:
    # A_norm[d, tgt, src] = (edge src->tgt) / max(in_degree(tgt), 1)
    e = (adj != 0.0).astype(jnp.float32)                       # [D, src, tgt]
    deg = jnp.sum(e, axis=1)                                   # [D, tgt]
    a_norm = jnp.swapaxes(e, 1, 2) / jnp.maximum(deg, 1.0)[..., None]
    a_norm = jnp.pad(a_norm, ((0, 0), (0, n_pad - n), (0, n_pad - n)))

    x_p = jnp.pad(x, ((0, n_pad - n), (0, cin_p - cin)))

    lin1 = _pad_linear(params["conv1_lin"], cin_p, hp)
    lin2 = _pad_linear(params["conv2_lin"], hp, hp)
    gru = _pack_gru(params["gru"], hp)

    e1 = _tgnn_conv(x_p, a_norm, lin1, gru, tile=tile)
    e2 = _tgnn_conv(e1, a_norm, lin2, gru, tile=tile)

    # Pre-normalized one-hot graph membership -> pool is a single matmul.
    onehot = (offset[None, :] == jnp.arange(num_graphs)[:, None]).astype(jnp.float32)
    pool = onehot / jnp.maximum(jnp.sum(onehot, axis=1, keepdims=True), 1.0)
    pool = jnp.pad(pool, ((0, g_pad - num_graphs), (0, n_pad - n)))

    out = _global_mean_pool(e2, pool)
    return out[:num_graphs, :h]


# -----------------------------------------------------------------------------
# Deterministic parameter construction (shapes mirror the PyTorch module,
# weights pre-transposed to [in, out])
# -----------------------------------------------------------------------------
def init_params(key, in_channel, out_channel):
    h = out_channel
    ks = jax.random.split(key, 8)

    def lin(kw, kb, fan_in, fan_out):
        scale = 1.0 / jnp.sqrt(fan_in)
        w = jax.random.uniform(kw, (fan_in, fan_out), jnp.float32, -scale, scale)
        b = jax.random.uniform(kb, (1, fan_out), jnp.float32, -scale, scale)
        return {"w": w, "b": b}

    conv1_lin = lin(ks[0], ks[1], in_channel, h)   # Linear(256 -> 64) analogue
    conv2_lin = lin(ks[2], ks[3], h, h)            # Linear(64 -> 64) analogue

    # Shared torch.nn.GRU(h, h): weight_ih_l0 [3h, h], weight_hh_l0 [3h, h],
    # split into (r, z, n) chunks and transposed to [h, h].
    scale = 1.0 / jnp.sqrt(h)
    w_ih = jax.random.uniform(ks[4], (3 * h, h), jnp.float32, -scale, scale)
    w_hh = jax.random.uniform(ks[5], (3 * h, h), jnp.float32, -scale, scale)
    b_ih = jax.random.uniform(ks[6], (3 * h,), jnp.float32, -scale, scale)
    b_hh = jax.random.uniform(ks[7], (3 * h,), jnp.float32, -scale, scale)
    gru = {
        "w_ir": w_ih[0 * h:1 * h].T, "w_iz": w_ih[1 * h:2 * h].T, "w_in": w_ih[2 * h:3 * h].T,
        "w_hr": w_hh[0 * h:1 * h].T, "w_hz": w_hh[1 * h:2 * h].T, "w_hn": w_hh[2 * h:3 * h].T,
        "b_ir": b_ih[0 * h:1 * h][None, :], "b_iz": b_ih[1 * h:2 * h][None, :],
        "b_in": b_ih[2 * h:3 * h][None, :],
        "b_hr": b_hh[0 * h:1 * h][None, :], "b_hz": b_hh[1 * h:2 * h][None, :],
        "b_hn": b_hh[2 * h:3 * h][None, :],
    }
    return {"conv1_lin": conv1_lin, "conv2_lin": conv2_lin, "gru": gru}


# Pure-JAX reference mirroring the PyTorch forward (for a correctness check).
def tgnn_reference(x, offset, adj, params, num_graphs):
    hiprec = jax.lax.Precision.HIGHEST

    def _mm(a, b):
        return jnp.dot(a, b, precision=hiprec)

    def conv(x, lin, gru):
        x = _mm(x, lin["w"]) + lin["b"]
        for d in range(adj.shape[0]):
            e = (adj[d] != 0.0).astype(jnp.float32)
            deg = jnp.sum(e, axis=0)[:, None]
            h = _mm(e.T, x) / jnp.maximum(deg, 1.0)
            r = jax.nn.sigmoid(_mm(x, gru["w_ir"]) + gru["b_ir"]
                               + _mm(h, gru["w_hr"]) + gru["b_hr"])
            z = jax.nn.sigmoid(_mm(x, gru["w_iz"]) + gru["b_iz"]
                               + _mm(h, gru["w_hz"]) + gru["b_hz"])
            n = jnp.tanh(_mm(x, gru["w_in"]) + gru["b_in"]
                         + r * (_mm(h, gru["w_hn"]) + gru["b_hn"]))
            h_hat = (1.0 - z) * n + z * h
            x = jnp.where(h == 0.0, x, h_hat)
        return jnp.maximum(x, 0.0)

    e1 = conv(x, params["conv1_lin"], params["gru"])
    e2 = conv(e1, params["conv2_lin"], params["gru"])
    onehot = (offset[None, :] == jnp.arange(num_graphs)[:, None]).astype(jnp.float32)
    return _mm(onehot, e2) / jnp.maximum(jnp.sum(onehot, axis=1, keepdims=True), 1.0)


if __name__ == "__main__":
    # Small shapes consistent with the module: x [N, in_channel], edge [D, N, N],
    # offset [N] graph-membership ids.
    N_NODES = 16
    IN_CHANNEL = 64      # stands in for 256 in the full model
    OUT_CHANNEL = 32     # stands in for 64 (emd_channel == out_channel)
    N_EDGE_LAYERS = 2    # D
    N_GRAPHS = 2

    key = jax.random.PRNGKey(0)
    k_par, k_x, k_adj, k_off = jax.random.split(key, 4)

    params = init_params(k_par, IN_CHANNEL, OUT_CHANNEL)
    x = jax.random.normal(k_x, (N_NODES, IN_CHANNEL), jnp.float32)
    # Dense stand-in for the sparse edge tensor: nonzero entry => edge src -> tgt.
    adj = (jax.random.uniform(k_adj, (N_EDGE_LAYERS, N_NODES, N_NODES)) < 0.3
           ).astype(jnp.float32)
    # Graph membership (sorted, as produced by PyG batching).
    offset = jnp.sort(jax.random.randint(k_off, (N_NODES,), 0, N_GRAPHS))

    out = tgnn_forward(x, offset, adj, params, num_graphs=N_GRAPHS)
    jax.block_until_ready(out)
    assert out.shape == (N_GRAPHS, OUT_CHANNEL)

    ref = tgnn_reference(x, offset, adj, params, N_GRAPHS)
    assert jnp.allclose(out, ref, atol=2e-3, rtol=2e-3), (
        f"mismatch vs reference, max abs diff = {jnp.max(jnp.abs(out - ref))}")

    print("KERNEL_OK")
</pallas_src>

<mosaic_0001>
module attributes {stable_mosaic.version = 11 : i64} {
  func.func @global_mean_pool_kernel(%arg0: memref<8x16xf32, #tpu.memory_space<vmem>>, %arg1: memref<16x128xf32, #tpu.memory_space<vmem>>, %arg2: memref<8x128xf32, #tpu.memory_space<vmem>>) attributes {dimension_semantics = [], scalar_prefetch = 0 : i64, scratch_operands = 0 : i64, tpu.core_type = #tpu.core_type<tc>} {
    %c0 = arith.constant 0 : index
    %c0_0 = arith.constant 0 : index
    %0 = vector.load %arg0[%c0, %c0_0] : memref<8x16xf32, #tpu.memory_space<vmem>>, vector<8x16xf32>
    %c0_1 = arith.constant 0 : index
    %c0_2 = arith.constant 0 : index
    %1 = vector.load %arg1[%c0_1, %c0_2] : memref<16x128xf32, #tpu.memory_space<vmem>>, vector<16x128xf32>
    %cst = arith.constant dense<0.000000e+00> : vector<8x128xf32>
    %2 = tpu.matmul %0, %1, %cst {dimension_numbers = #tpu.dot_dimension_numbers<[1], [0], [0], [1], [0, 0, 1, 1], [], []>} : vector<8x16xf32>, vector<16x128xf32>, vector<8x128xf32> -> vector<8x128xf32>
    %c0_3 = arith.constant 0 : index
    %c0_4 = arith.constant 0 : index
    %3 = vector.load %arg2[%c0_3, %c0_4] : memref<8x128xf32, #tpu.memory_space<vmem>>, vector<8x128xf32>
    tpu.vector_store %arg2[%c0_3, %c0_4], %2 {strides = array<i32>} : memref<8x128xf32, #tpu.memory_space<vmem>>, vector<8x128xf32>,
    return
  }
}

module attributes {stable_mosaic.version = 11 : i64} {
  func.func @tgnn_conv_kernel(%arg0: i32, %arg1: i32, %arg2: memref<1x16x16xf32, #tpu.memory_space<vmem>>, %arg3: memref<16x128xf32, #tpu.memory_space<vmem>>, %arg4: memref<128x128xf32, #tpu.memory_space<vmem>>, %arg5: memref<1x128xf32, #tpu.memory_space<vmem>>, %arg6: memref<128x384xf32, #tpu.memory_space<vmem>>, %arg7: memref<1x384xf32, #tpu.memory_space<vmem>>, %arg8: memref<128x384xf32, #tpu.memory_space<vmem>>, %arg9: memref<1x384xf32, #tpu.memory_space<vmem>>, %arg10: memref<16x128xf32, #tpu.memory_space<vmem>>, %arg11: memref<16x128xf32, #tpu.memory_space<vmem>>) attributes {dimension_semantics = [#tpu.dimension_semantics<arbitrary>, #tpu.dimension_semantics<arbitrary>], iteration_bounds = array<i64: 2, 1>, scalar_prefetch = 0 : i64, scratch_operands = 1 : i64, tpu.core_type = #tpu.core_type<tc>, window_params = [{transform_indices = @transform_0, window_bounds = array<i64: 1, 16, 16>}, {pipeline_mode = #tpu.pipeline_mode<synchronous>, transform_indices = @transform_1, window_bounds = array<i64: 16, 128>}, {pipeline_mode = #tpu.pipeline_mode<synchronous>, transform_indices = @transform_2, window_bounds = array<i64: 128, 128>}, {pipeline_mode = #tpu.pipeline_mode<synchronous>, transform_indices = @transform_3, window_bounds = array<i64: 1, 128>}, {pipeline_mode = #tpu.pipeline_mode<synchronous>, transform_indices = @transform_4, window_bounds = array<i64: 128, 384>}, {pipeline_mode = #tpu.pipeline_mode<synchronous>, transform_indices = @transform_5, window_bounds = array<i64: 1, 384>}, {pipeline_mode = #tpu.pipeline_mode<synchronous>, transform_indices = @transform_6, window_bounds = array<i64: 128, 384>}, {pipeline_mode = #tpu.pipeline_mode<synchronous>, transform_indices = @transform_7, window_bounds = array<i64: 1, 384>}, {pipeline_mode = #tpu.pipeline_mode<synchronous>, transform_indices = @transform_8, window_bounds = array<i64: 16, 128>}]} {
    %c0_i32 = arith.constant 0 : i32
    %0 = arith.cmpi eq, %arg0, %c0_i32 : i32
    %c0_i32_0 = arith.constant 0 : i32
    %1 = arith.cmpi eq, %arg1, %c0_i32_0 : i32
    %2 = arith.andi %0, %1 : i1
    %3 = arith.extui %2 : i1 to i32
    %c0_i32_1 = arith.constant 0 : i32
    %4 = arith.cmpi ne, %3, %c0_i32_1 : i32
    scf.if %4 {
      %c0_26 = arith.constant 0 : index
      %c0_27 = arith.constant 0 : index
      %63 = vector.load %arg3[%c0_26, %c0_27] : memref<16x128xf32, #tpu.memory_space<vmem>>, vector<16x128xf32>
      %c0_28 = arith.constant 0 : index
      %c0_29 = arith.constant 0 : index
      %64 = vector.load %arg4[%c0_28, %c0_29] : memref<128x128xf32, #tpu.memory_space<vmem>>, vector<128x128xf32>
      %cst_30 = arith.constant dense<0.000000e+00> : vector<16x128xf32>
      %65 = tpu.matmul %63, %64, %cst_30 {dimension_numbers = #tpu.dot_dimension_numbers<[1], [0], [0], [1], [0, 0, 1, 1], [], []>} : vector<16x128xf32>, vector<128x128xf32>, vector<16x128xf32> -> vector<16x128xf32>
      %c0_31 = arith.constant 0 : index
      %c0_32 = arith.constant 0 : index
      %66 = vector.load %arg5[%c0_31, %c0_32] : memref<1x128xf32, #tpu.memory_space<vmem>>, vector<1x128xf32>
      %67 = vector.broadcast %66 : vector<1x128xf32> to vector<16x128xf32>
      %68 = arith.addf %65, %67 : vector<16x128xf32>
      %c0_33 = arith.constant 0 : index
      %c0_34 = arith.constant 0 : index
      %69 = vector.load %arg11[%c0_33, %c0_34] : memref<16x128xf32, #tpu.memory_space<vmem>>, vector<16x128xf32>
      tpu.vector_store %arg11[%c0_33, %c0_34], %68 {strides = array<i32>} : memref<16x128xf32, #tpu.memory_space<vmem>>, vector<16x128xf32>,
    } else {
    }
    %c16_i32 = arith.constant 16 : i32
    %5 = arith.muli %arg1, %c16_i32 : i32
    %6 = tpu.assume_multiple %5, 16 : i32
    %c0 = arith.constant 0 : index
    %c0_2 = arith.constant 0 : index
    %c0_3 = arith.constant 0 : index
    %7 = vector.load %arg2[%c0, %c0_2, %c0_3] : memref<1x16x16xf32, #tpu.memory_space<vmem>>, vector<1x16x16xf32>
    %8 = vector.shape_cast %7 : vector<1x16x16xf32> to vector<16x16xf32>
    %c0_4 = arith.constant 0 : index
    %c0_5 = arith.constant 0 : index
    %9 = vector.load %arg11[%c0_4, %c0_5] : memref<16x128xf32, #tpu.memory_space<vmem>>, vector<16x128xf32>
    %cst = arith.constant dense<0.000000e+00> : vector<16x128xf32>
    %10 = tpu.matmul %8, %9, %cst {dimension_numbers = #tpu.dot_dimension_numbers<[1], [0], [0], [1], [0, 0, 1, 1], [], []>} : vector<16x16xf32>, vector<16x128xf32>, vector<16x128xf32> -> vector<16x128xf32>
    %11 = arith.index_cast %6 : i32 to index
    %c0_6 = arith.constant 0 : index
    %12 = vector.load %arg11[%11, %c0_6] : memref<16x128xf32, #tpu.memory_space<vmem>>, vector<16x128xf32>
    %c0_7 = arith.constant 0 : index
    %c0_8 = arith.constant 0 : index
    %13 = vector.load %arg6[%c0_7, %c0_8] : memref<128x384xf32, #tpu.memory_space<vmem>>, vector<128x384xf32>
    %cst_9 = arith.constant dense<0.000000e+00> : vector<16x384xf32>
    %14 = tpu.matmul %12, %13, %cst_9 {dimension_numbers = #tpu.dot_dimension_numbers<[1], [0], [0], [1], [0, 0, 1, 1], [], []>} : vector<16x128xf32>, vector<128x384xf32>, vector<16x384xf32> -> vector<16x384xf32>
    %c0_10 = arith.constant 0 : index
    %c0_11 = arith.constant 0 : index
    %15 = vector.load %arg7[%c0_10, %c0_11] : memref<1x384xf32, #tpu.memory_space<vmem>>, vector<1x384xf32>
    %16 = vector.broadcast %15 : vector<1x384xf32> to vector<16x384xf32>
    %17 = arith.addf %14, %16 : vector<16x384xf32>
    %c0_12 = arith.constant 0 : index
    %c0_13 = arith.constant 0 : index
    %18 = vector.load %arg8[%c0_12, %c0_13] : memref<128x384xf32, #tpu.memory_space<vmem>>, vector<128x384xf32>
    %cst_14 = arith.constant dense<0.000000e+00> : vector<16x384xf32>
    %19 = tpu.matmul %10, %18, %cst_14 {dimension_numbers = #tpu.dot_dimension_numbers<[1], [0], [0], [1], [0, 0, 1, 1], [], []>} : vector<16x128xf32>, vector<128x384xf32>, vector<16x384xf32> -> vector<16x384xf32>
    %c0_15 = arith.constant 0 : index
    %c0_16 = arith.constant 0 : index
    %20 = vector.load %arg9[%c0_15, %c0_16] : memref<1x384xf32, #tpu.memory_space<vmem>>, vector<1x384xf32>
    %21 = vector.broadcast %20 : vector<1x384xf32> to vector<16x384xf32>
    %22 = arith.addf %19, %21 : vector<16x384xf32>
    %23 = vector.extract_strided_slice %17 {offsets = [0, 0], sizes = [16, 128], strides = [1, 1]} : vector<16x384xf32> to vector<16x128xf32>
    %24 = vector.extract_strided_slice %22 {offsets = [0, 0], sizes = [16, 128], strides = [1, 1]} : vector<16x384xf32> to vector<16x128xf32>
    %25 = arith.addf %23, %24 : vector<16x128xf32>
    %26 = arith.negf %25 : vector<16x128xf32>
    %27 = math.exp %26 : vector<16x128xf32>
    %cst_17 = arith.constant 1.000000e+00 : f32
    %28 = vector.broadcast %cst_17 : f32 to vector<16x128xf32>
    %29 = arith.addf %28, %27 : vector<16x128xf32>
    %30 = arith.divf %28, %29 : vector<16x128xf32>
    %31 = vector.extract_strided_slice %17 {offsets = [0, 128], sizes = [16, 128], strides = [1, 1]} : vector<16x384xf32> to vector<16x128xf32>
    %32 = vector.extract_strided_slice %22 {offsets = [0, 128], sizes = [16, 128], strides = [1, 1]} : vector<16x384xf32> to vector<16x128xf32>
    %33 = arith.addf %31, %32 : vector<16x128xf32>
    %34 = arith.negf %33 : vector<16x128xf32>
    %35 = math.exp %34 : vector<16x128xf32>
    %cst_18 = arith.constant 1.000000e+00 : f32
    %36 = vector.broadcast %cst_18 : f32 to vector<16x128xf32>
    %37 = arith.addf %36, %35 : vector<16x128xf32>
    %38 = arith.divf %36, %37 : vector<16x128xf32>
    %39 = vector.extract_strided_slice %17 {offsets = [0, 256], sizes = [16, 128], strides = [1, 1]} : vector<16x384xf32> to vector<16x128xf32>
    %40 = vector.extract_strided_slice %22 {offsets = [0, 256], sizes = [16, 128], strides = [1, 1]} : vector<16x384xf32> to vector<16x128xf32>
    %41 = arith.mulf %30, %40 : vector<16x128xf32>
    %42 = arith.addf %39, %41 : vector<16x128xf32>
    %43 = math.tanh %42 : vector<16x128xf32>
    %cst_19 = arith.constant 1.000000e+00 : f32
    %44 = vector.broadcast %cst_19 : f32 to vector<16x128xf32>
    %45 = arith.subf %44, %38 : vector<16x128xf32>
    %46 = arith.mulf %45, %43 : vector<16x128xf32>
    %47 = arith.mulf %38, %10 : vector<16x128xf32>
    %48 = arith.addf %46, %47 : vector<16x128xf32>
    %cst_20 = arith.constant 0.000000e+00 : f32
    %49 = vector.broadcast %cst_20 : f32 to vector<16x128xf32>
    %50 = arith.cmpf oeq, %10, %49 : vector<16x128xf32>
    %51 = arith.select %50, %12, %48 : vector<16x128xi1>, vector<16x128xf32>
    %c1_i32 = arith.constant 1 : i32
    %52 = arith.cmpi eq, %arg0, %c1_i32 : i32
    %cst_21 = arith.constant 0.000000e+00 : f32
    %53 = vector.broadcast %cst_21 : f32 to vector<16x128xf32>
    %54 = arith.maximumf %51, %53 : vector<16x128xf32>
    %55 = arith.select %52, %54, %51 : vector<16x128xf32>
    %56 = arith.index_cast %6 : i32 to index
    %c0_22 = arith.constant 0 : index
    %57 = vector.load %arg10[%56, %c0_22] : memref<16x128xf32, #tpu.memory_space<vmem>>, vector<16x128xf32>
    tpu.vector_store %arg10[%56, %c0_22], %55 {strides = array<i32>} : memref<16x128xf32, #tpu.memory_space<vmem>>, vector<16x128xf32>,
    %c0_i32_23 = arith.constant 0 : i32
    %58 = arith.cmpi eq, %arg1, %c0_i32_23 : i32
    %c1_i32_24 = arith.constant 1 : i32
    %59 = arith.cmpi slt, %arg0, %c1_i32_24 : i32
    %60 = arith.andi %58, %59 : i1
    %61 = arith.extui %60 : i1 to i32
    %c0_i32_25 = arith.constant 0 : i32
    %62 = arith.cmpi ne, %61, %c0_i32_25 : i32
    scf.if %62 {
      %c0_26 = arith.constant 0 : index
      %c0_27 = arith.constant 0 : index
      %63 = vector.load %arg10[%c0_26, %c0_27] : memref<16x128xf32, #tpu.memory_space<vmem>>, vector<16x128xf32>
      %c0_28 = arith.constant 0 : index
      %c0_29 = arith.constant 0 : index
      %64 = vector.load %arg11[%c0_28, %c0_29] : memref<16x128xf32, #tpu.memory_space<vmem>>, vector<16x128xf32>
      tpu.vector_store %arg11[%c0_28, %c0_29], %63 {strides = array<i32>} : memref<16x128xf32, #tpu.memory_space<vmem>>, vector<16x128xf32>,
    } else {
    }
    return
  }
  func.func @transform_0(%arg0: i32, %arg1: i32) -> (i32, i32, i32) {
    %c0_i32 = arith.constant 0 : i32
    %c0_i32_0 = arith.constant 0 : i32
    return %arg0, %arg1, %c0_i32 : i32, i32, i32
  }
  func.func @transform_1(%arg0: i32, %arg1: i32) -> (i32, i32) {
    %c0_i32 = arith.constant 0 : i32
    %c0_i32_0 = arith.constant 0 : i32
    %c0_i32_1 = arith.constant 0 : i32
    return %c0_i32, %c0_i32_0 : i32, i32
  }
  func.func @transform_2(%arg0: i32, %arg1: i32) -> (i32, i32) {
    %c0_i32 = arith.constant 0 : i32
    %c0_i32_0 = arith.constant 0 : i32
    %c0_i32_1 = arith.constant 0 : i32
    return %c0_i32, %c0_i32_0 : i32, i32
  }
  func.func @transform_3(%arg0: i32, %arg1: i32) -> (i32, i32) {
    %c0_i32 = arith.constant 0 : i32
    %c0_i32_0 = arith.constant 0 : i32
    %c0_i32_1 = arith.constant 0 : i32
    return %c0_i32, %c0_i32_0 : i32, i32
  }
  func.func @transform_4(%arg0: i32, %arg1: i32) -> (i32, i32) {
    %c0_i32 = arith.constant 0 : i32
    %c0_i32_0 = arith.constant 0 : i32
    %c0_i32_1 = arith.constant 0 : i32
    return %c0_i32, %c0_i32_0 : i32, i32
  }
  func.func @transform_5(%arg0: i32, %arg1: i32) -> (i32, i32) {
    %c0_i32 = arith.constant 0 : i32
    %c0_i32_0 = arith.constant 0 : i32
    %c0_i32_1 = arith.constant 0 : i32
    return %c0_i32, %c0_i32_0 : i32, i32
  }
  func.func @transform_6(%arg0: i32, %arg1: i32) -> (i32, i32) {
    %c0_i32 = arith.constant 0 : i32
    %c0_i32_0 = arith.constant 0 : i32
    %c0_i32_1 = arith.constant 0 : i32
    return %c0_i32, %c0_i32_0 : i32, i32
  }
  func.func @transform_7(%arg0: i32, %arg1: i32) -> (i32, i32) {
    %c0_i32 = arith.constant 0 : i32
    %c0_i32_0 = arith.constant 0 : i32
    %c0_i32_1 = arith.constant 0 : i32
    return %c0_i32, %c0_i32_0 : i32, i32
  }
  func.func @transform_8(%arg0: i32, %arg1: i32) -> (i32, i32) {
    %c0_i32 = arith.constant 0 : i32
    %c0_i32_0 = arith.constant 0 : i32
    %c0_i32_1 = arith.constant 0 : i32
    return %c0_i32, %c0_i32_0 : i32, i32
  }
}

</mosaic_0001>

<bundles_post_ra>
// kernel: tgnn_forward.5
= control target key start
LH: loop header
LB: loop body
LE: loop exit
PB: predicated region body
PF: predicated region fallthrough
CT: control target
= control target key end

     0   :  { %v106_v0 = vmov 0.0   ;;  %vm107_vm0 = vmmov 0   ;;  %vm14_vm1 = vcmask 130048   ;;  %s135_s1 = inlined_call_operand.vmem [shape: f32[16,128], index: 1, kind: input, shape index: {}]   ;;  %s136_s0 = inlined_call_operand.vmem [shape: f32[8,16], index: 0, kind: input, shape index: {}]   ;;  %s137_s2 = inlined_call_operand.vmem [shape: f32[8,128], index: 2, kind: output, shape index: {}]  }
   0x1   :  { %97 = vmatprep.subr.mxu0 %v106_v0  ;;  %v13_v1 = vld [vmem:[%s135_s1 + $0x8] sm:$0xff]  ;;  %v12_v2 = vld [vmem:[%s135_s1] sm:$0xff]  ;;  %101 = vmatprep.mubr.msk.f32.mxu0 %vm107_vm0, %v106_v0 }
   0x2   :  { %98 = vmatpush3.msra.mxu0 %v13_v1  ;;  %v11_v3 = vld [vmem:[%s136_s0] sm:$0xff] }
   0x3   :  { %99 = vmatprep.subr.mxu0 %v106_v0 }
   0x4   :  { %100 = vmatpush3.msra.mxu0 %v12_v2 }
   0x5   :  { %102 = vmatmul.mubr.msk.f32.vlgmr.msra.gmra.mxu0 %vm14_vm1, %v11_v3 }
  0xc5   :  { %v84_v4 = vpop.f32.mrf.mxu0 }
  0xc6   :  { %88 = vst [vmem:[%s137_s2] sm:$0xff] %v84_v4 }
  0xc7   :  { %v103_v5 = vpop.f32.mrf.mxu0 }

// kernel: tgnn_forward.3
= control target key start
LH: loop header
LB: loop body
LE: loop exit
PB: predicated region body
PF: predicated region fallthrough
CT: control target
= control target key end

     0   :  { %s1368_s27 = smov 0   ;;  %s1370_s28 = smov 0   ;;  %s1807_s0 = inlined_call_operand.vmem [shape: f32[2,16,16], index: 0, kind: input, shape index: {}]   ;;  %s1808_s1 = inlined_call_operand.vmem [shape: f32[16,128], index: 1, kind: input, shape index: {}]   ;;  %s1809_s2 = inlined_call_operand.vmem [shape: f32[128,128], index: 2, kind: input, shape index: {}]   ;;  %s1810_s3 = inlined_call_operand.vmem [shape: f32[1,128], index: 3, kind: input, shape index: {}]   ;;  %s1811_s4 = inlined_call_operand.vmem [shape: f32[128,384], index: 4, kind: input, shape index: {}]   ;;  %s1812_s5 = inlined_call_operand.vmem [shape: f32[1,384], index: 5, kind: input, shape index: {}]   ;;  %s1813_s6 = inlined_call_operand.vmem [shape: f32[128,384], index: 6, kind: input, shape index: {}]   ;;  %s1814_s7 = inlined_call_operand.vmem [shape: f32[1,384], index: 7, kind: input, shape index: {}]   ;;  %s1815_s8 = inlined_call_operand.vmem [shape: f32[16,128], index: 8, kind: output, shape index: {}]  }
   0x1   :  { %s1372_s29 = smov 0  }
   0x2 LB: > { %s30_s30 = sadd.s32 1, %s1316_s28  ;;  %p1066_p0 = scmp.ge.s32.totalorder %s1320_s29, 1  ;;  %s1320_s29 = sphi %s1372_s29, %s18_s29   ;;  %s1316_s28 = sphi %s1370_s28, %s1817_s28   ;;  %s1312_s27 = sphi %s1368_s27, %s1816_s27  }
   0x3   : > { %p32_p1 = scmp.ge.s32.totalorder %s30_s30, 2  ;;  %p276_p2 = scmp.lt.s32.totalorder %s1320_s29, 3 }
   0x5   : > { %s1819_s30 = smov (%p32_p1, %s30_s30), 0  ;;  %p277_p3 = pnand %p1066_p0, %p276_p2 }
   0x6   : > { %p310_p4 = scmp.lt.s32.totalorder (!%p277_p3), %s1312_s27, 1  ;;  %p319_p5 = scmp.eq.s32.totalorder (!%p277_p3), %s1312_s27, 0 }
   0x7   : > { %280 = sbr.rel (%p277_p3) target bundleno = 715 (0x2cb), region = 52 }
   0xc   : > { %s311_s9 = scalar_select %p310_p4, %s1312_s27, 1  ;;  %v342_v0 = vld [vmem:[%s1809_s2 + $0x78] sm:$0xff] (%p319_p5)  ;;  %v341_v1 = vld [vmem:[%s1809_s2 + $0x70] sm:$0xff] (%p319_p5)  ;;  %v340_v2 = vld [vmem:[%s1809_s2 + $0x68] sm:$0xff] (%p319_p5) }
   0xd   : > { %324 = sbr.rel (!%p319_p5) target bundleno = 243 (0xf3), region = 56  ;;  %1141 = vmatprep.subr.mxu0 (%p319_p5), %v342_v0  ;;  %v339_v3 = vld [vmem:[%s1809_s2 + $0x60] sm:$0xff] (%p319_p5)  ;;  %v338_v5 = vld [vmem:[%s1809_s2 + $0x58] sm:$0xff] (%p319_p5)  ;;  %v337_v6 = vld [vmem:[%s1809_s2 + $0x50] sm:$0xff] (%p319_p5) }
   0xe   : > { %s1080_s10 = sshll.u32 %s311_s9, 4  ;;  %1142 = vmatpush3.msra.mxu0 (%p319_p5), %v342_v0  ;;  %v325_v4 = vld [vmem:[%s1808_s1] sm:$0xff] (%p319_p5)  ;;  %v336_v7 = vld [vmem:[%s1809_s2 + $0x48] sm:$0xff] (%p319_p5)  ;;  %v334_v9 = vld [vmem:[%s1809_s2 + $0x38] sm:$0xff] (%p319_p5) }
   0xf   : > { %s1396_s13 = scalar_lea.vmem %s1807_s0, %s1080_s10  ;;  %1143 = vmatprep.subr.mxu0 (%p319_p5), %v341_v1  ;;  %1173 = vmatprep.mubr.f32.mxu0 (%p319_p5), %v325_v4  ;;  %v335_v8 = vld [vmem:[%s1809_s2 + $0x40] sm:$0xff] (%p319_p5)  ;;  %v333_v10 = vld [vmem:[%s1809_s2 + $0x30] sm:$0xff] (%p319_p5)  ;;  %v332_v11 = vld [vmem:[%s1809_s2 + $0x28] sm:$0xff] (%p319_p5) }
  0x10   : > { %1144 = vmatpush3.msra.mxu0 (%p319_p5), %v341_v1  ;;  %v331_v12 = vld [vmem:[%s1809_s2 + $0x20] sm:$0xff] (%p319_p5)  ;;  %v330_v13 = vld [vmem:[%s1809_s2 + $0x18] sm:$0xff] (%p319_p5)  ;;  %v329_v14 = vld [vmem:[%s1809_s2 + $0x10] sm:$0xff] (%p319_p5) }
  0x11   : > { %1145 = vmatprep.subr.mxu0 (%p319_p5), %v340_v2  ;;  %v328_v15 = vld [vmem:[%s1809_s2 + $0x8] sm:$0xff] (%p319_p5)  ;;  %v327_v16 = vld [vmem:[%s1809_s2] sm:$0xff] (%p319_p5) }
  0x12   : > { %1146 = vmatpush3.msra.mxu0 %v340_v2  ;;  %v326_v17 = vld [vmem:[%s1808_s1 + $0x8] sm:$0xff]  ;;  %v1070_v18 = vld [vmem:[%s1810_s3] ss:$0 sm:$0xff] }
  0x13   : > { %1147 = vmatprep.subr.mxu0 %v339_v3 }
  0x14   : > { %1148 = vmatpush3.msra.mxu0 %v339_v3 }
  0x15   : > { %1149 = vmatprep.subr.mxu0 %v338_v5 }
  0x16   : > { %1150 = vmatpush3.msra.mxu0 %v338_v5 }
  0x17   : > { %1151 = vmatprep.subr.mxu0 %v337_v6 }
  0x18   : > { %1152 = vmatpush3.msra.mxu0 %v337_v6 }
  0x19   : > { %1153 = vmatprep.subr.mxu0 %v336_v7 }
  0x1a   : > { %1154 = vmatpush3.msra.mxu0 %v336_v7 }
  0x1b   : > { %1155 = vmatprep.subr.mxu0 %v335_v8 }
  0x1c   : > { %1156 = vmatpush3.msra.mxu0 %v335_v8 }
  0x1d   : > { %1157 = vmatprep.subr.mxu0 %v334_v9 }
  0x1e   : > { %1158 = vmatpush3.msra.mxu0 %v334_v9 }
  0x1f   : > { %1159 = vmatprep.subr.mxu0 %v333_v10 }
  0x20   : > { %1160 = vmatpush3.msra.mxu0 %v333_v10 }
  0x21   : > { %1161 = vmatprep.subr.mxu0 %v332_v11 }
  0x22   : > { %1162 = vmatpush3.msra.mxu0 %v332_v11 }
  0x23   : > { %1163 = vmatprep.subr.mxu0 %v331_v12 }
  0x24   : > { %1164 = vmatpush3.msra.mxu0 %v331_v12 }
  0x25   : > { %1165 = vmatprep.subr.mxu0 %v330_v13 }
  0x26   : > { %1166 = vmatpush3.msra.mxu0 %v330_v13 }
  0x27   : > { %1167 = vmatprep.subr.mxu0 %v329_v14 }
  0x28   : > { %1168 = vmatpush3.msra.mxu0 %v329_v14 }
  0x29   : > { %1169 = vmatprep.subr.mxu0 %v328_v15 }
  0x2a   : > { %1170 = vmatpush3.msra.mxu0 %v328_v15 }
  0x2b   : > { %1171 = vmatprep.subr.mxu0 %v327_v16 }
  0x2c   : > { %1172 = vmatpush3.msra.mxu0 %v327_v16 }
  0x2d   : > { %1174 = vmatmul.mubr.f32.vlgmr.msra.gmra.mxu0 %v326_v17 }
  0xed   : > { %v1175_v19 = vpop.f32.mrf.mxu0 }
  0xee   : > { %v422_v20 = vadd.f32 %v1175_v19, %v1070_v18 }
  0xef   : > { %v416_v21 = vpop.f32.mrf.mxu0 }
  0xf0   : > { %426 = vst [vmem:[#allocation2 + $0x8] sm:$0xff] %v422_v20  ;;  %v417_v22 = vadd.f32 %v1070_v18, %v416_v21 }
  0xf2   : > { %425 = vst [vmem:[#allocation2] sm:$0xff] %v417_v22 }
  0xf3 PF: > { %v428_v25 = vld [vmem:[%s1396_s13] sm:$0xff]  ;;  %vm432_vm0 = vcmask 130048   ;;  %v563_v26 = vld [vmem:[%s1811_s4 + $0x170] sm:$0xff]  ;;  %v562_v27 = vld [vmem:[%s1811_s4 + $0x168] sm:$0xff]  ;;  %v1322_v12 = vmov 0.0   ;;  %p997_p6 = scmp.eq.s32.totalorder %s1312_s27, 1 }
  0xf4   : > { %1180 = vmatprep.mubr.msk.f32.mxu0 %vm432_vm0, %v428_v25  ;;  %v429_v28 = vld [vmem:[%s1396_s13 + $0x8] sm:$0xff]  ;;  %582 = vmatprep.subr.mxu1 %v563_v26  ;;  %v560_v29 = vld [vmem:[%s1811_s4 + $0x158] sm:$0xff]  ;;  %v559_v31 = vld [vmem:[%s1811_s4 + $0x150] sm:$0xff] }
  0xf5   : > { %v564_v30 = vld [vmem:[%s1811_s4 + $0x178] sm:$0xff]  ;;  %583 = vmatpush1.msra.mxu1 %v562_v27  ;;  %v557_v32 = vld [vmem:[%s1811_s4 + $0x140] sm:$0xff]  ;;  %v554_v35 = vld [vmem:[%s1811_s4 + $0x128] sm:$0xff]  ;;  %646 = vmatprep.mubr.f32.mxu1 %v1322_v12  ;;  %s1000_s16 = scalar_select %p997_p6, 1, 0 }
  0xf6   : > { %584 = vmatprep.subr.mxu1 %v560_v29  ;;  %v561_v33 = vld [vmem:[%s1811_s4 + $0x160] sm:$0xff]  ;;  %v556_v34 = vld [vmem:[%s1811_s4 + $0x138] sm:$0xff]  ;;  %v558_v36 = vld [vmem:[%s1811_s4 + $0x148] sm:$0xff] }
  0xf7   : > { %v1455_v23 = vld [vmem:[#allocation2 + $0x8] sm:$0xff]  ;;  %585 = vmatpush1.msra.mxu1 %v559_v31  ;;  %v553_v37 = vld [vmem:[%s1811_s4 + $0x120] sm:$0xff]  ;;  %v551_v38 = vld [vmem:[%s1811_s4 + $0x110] sm:$0xff] }
  0xf8   : > { %1176 = vmatprep.subr.mxu0 %v1455_v23  ;;  %586 = vmatprep.subr.mxu1 %v557_v32  ;;  %v555_v39 = vld [vmem:[%s1811_s4 + $0x130] sm:$0xff]  ;;  %v550_v40 = vld [vmem:[%s1811_s4 + $0x108] sm:$0xff]  ;;  %v548_v41 = vld [vmem:[%s1811_s4 + $0xf8] sm:$0xff] }
  0xf9   : > { %v1457_v24 = vld [vmem:[#allocation2] sm:$0xff]  ;;  %1177 = vmatpush3.msra.mxu0 %v1455_v23  ;;  %587 = vmatpush1.msra.mxu1 %v556_v34  ;;  %v552_v42 = vld [vmem:[%s1811_s4 + $0x118] sm:$0xff]  ;;  %v547_v43 = vld [vmem:[%s1811_s4 + $0xf0] sm:$0xff] }
  0xfa   : > { %1178 = vmatprep.subr.mxu0 %v1457_v24  ;;  %588 = vmatprep.subr.mxu1 %v554_v35  ;;  %v545_v44 = vld [vmem:[%s1811_s4 + $0xe0] sm:$0xff]  ;;  %v544_v46 = vld [vmem:[%s1811_s4 + $0xd8] sm:$0xff]  ;;  %v542_v47 = vld [vmem:[%s1811_s4 + $0xc8] sm:$0xff] }
  0xfb   : > { %1179 = vmatpush3.msra.mxu0 %v1457_v24  ;;  %589 = vmatpush1.msra.mxu1 %v553_v37  ;;  %v549_v45 = vld [vmem:[%s1811_s4 + $0x100] sm:$0xff]  ;;  %v546_v48 = vld [vmem:[%s1811_s4 + $0xe8] sm:$0xff]  ;;  %v539_v50 = vld [vmem:[%s1811_s4 + $0xb0] sm:$0xff] }
  0xfc   : > { %1181 = vmatmul.mubr.msk.f32.vlgmr.msra.gmra.mxu0 %vm432_vm0, %v429_v28  ;;  %1183 = vmatprep.subr.mxu0 %v564_v30  ;;  %v541_v49 = vld [vmem:[%s1811_s4 + $0xc0] sm:$0xff]  ;;  %v543_v51 = vld [vmem:[%s1811_s4 + $0xd0] sm:$0xff]  ;;  %v538_v52 = vld [vmem:[%s1811_s4 + $0xa8] sm:$0xff] }
  0xfd   : > { %1184 = vmatpush3.msra.mxu0 %v564_v30  ;;  %590 = vmatprep.subr.mxu1 %v551_v38  ;;  %v536_v53 = vld [vmem:[%s1811_s4 + $0x98] sm:$0xff]  ;;  %v535_v55 = vld [vmem:[%s1811_s4 + $0x90] sm:$0xff]  ;;  %v533_v56 = vld [vmem:[%s1811_s4 + $0x80] sm:$0xff] }
  0xfe   : > { %1185 = vmatprep.subr.mxu0 %v561_v33  ;;  %591 = vmatpush1.msra.mxu1 %v550_v40  ;;  %v540_v54 = vld [vmem:[%s1811_s4 + $0xb8] sm:$0xff]  ;;  %v537_v57 = vld [vmem:[%s1811_s4 + $0xa0] sm:$0xff]  ;;  %v530_v59 = vld [vmem:[%s1811_s4 + $0x68] sm:$0xff] }
  0xff   : > { %1186 = vmatpush3.msra.mxu0 %v561_v33  ;;  %592 = vmatprep.subr.mxu1 %v548_v41  ;;  %v532_v58 = vld [vmem:[%s1811_s4 + $0x78] sm:$0xff]  ;;  %v534_v60 = vld [vmem:[%s1811_s4 + $0x88] sm:$0xff]  ;;  %v529_v61 = vld [vmem:[%s1811_s4 + $0x60] sm:$0xff] }
 0x100   : > { %1187 = vmatprep.subr.mxu0 %v558_v36  ;;  %593 = vmatpush1.msra.mxu1 %v547_v43  ;;  %v527_v62 = vld [vmem:[%s1811_s4 + $0x50] sm:$0xff]  ;;  %v526_v0 = vld [vmem:[%s1811_s4 + $0x48] sm:$0xff]  ;;  %v524_v1 = vld [vmem:[%s1811_s4 + $0x38] sm:$0xff] }
 0x101   : > { %1188 = vmatpush3.msra.mxu0 %v558_v36  ;;  %594 = vmatprep.subr.mxu1 %v545_v44  ;;  %v531_v63 = vld [vmem:[%s1811_s4 + $0x70] sm:$0xff]  ;;  %v528_v2 = vld [vmem:[%s1811_s4 + $0x58] sm:$0xff]  ;;  %v521_v4 = vld [vmem:[%s1811_s4 + $0x20] sm:$0xff] }
 0x102   : > { %1189 = vmatprep.subr.mxu0 %v555_v39  ;;  %595 = vmatpush1.msra.mxu1 %v544_v46  ;;  %v523_v3 = vld [vmem:[%s1811_s4 + $0x30] sm:$0xff]  ;;  %v525_v5 = vld [vmem:[%s1811_s4 + $0x40] sm:$0xff]  ;;  %v520_v6 = vld [vmem:[%s1811_s4 + $0x18] sm:$0xff] }
 0x103   : > { %1190 = vmatpush3.msra.mxu0 %v555_v39  ;;  %596 = vmatprep.subr.mxu1 %v542_v47  ;;  %v518_v7 = vld [vmem:[%s1811_s4 + $0x8] sm:$0xff]  ;;  %v517_v9 = vld [vmem:[%s1811_s4] sm:$0xff]  ;;  %v519_v10 = vld [vmem:[%s1811_s4 + $0x10] sm:$0xff] }
 0x104   : > { %1191 = vmatprep.subr.mxu0 %v552_v42  ;;  %597 = vmatpush1.msra.mxu1 %v541_v49  ;;  %v522_v8 = vld [vmem:[%s1811_s4 + $0x28] sm:$0xff]  ;;  %v780_v11 = vld [vmem:[%s1813_s6 + $0x170] sm:$0xff]  ;;  %v781_v14 = vld [vmem:[%s1813_s6 + $0x178] sm:$0xff] }
 0x105   : > { %1192 = vmatpush3.msra.mxu0 %v552_v42  ;;  %598 = vmatprep.subr.mxu1 %v539_v50  ;;  %v779_v13 = vld [vmem:[%s1813_s6 + $0x168] sm:$0xff]  ;;  %v777_v15 = vld [vmem:[%s1813_s6 + $0x158] sm:$0xff]  ;;  %v776_v16 = vld [vmem:[%s1813_s6 + $0x150] sm:$0xff] }
 0x106   : > { %1193 = vmatprep.subr.mxu0 %v549_v45  ;;  %599 = vmatpush1.msra.mxu1 %v538_v52  ;;  %v778_v17 = vld [vmem:[%s1813_s6 + $0x160] sm:$0xff]  ;;  %v773_v19 = vld [vmem:[%s1813_s6 + $0x138] sm:$0xff]  ;;  %v775_v20 = vld [vmem:[%s1813_s6 + $0x148] sm:$0xff] }
 0x107   : > { %1194 = vmatpush3.msra.mxu0 %v549_v45  ;;  %600 = vmatprep.subr.mxu1 %v536_v53  ;;  %v774_v18 = vld [vmem:[%s1813_s6 + $0x140] sm:$0xff]  ;;  %v771_v21 = vld [vmem:[%s1813_s6 + $0x128] sm:$0xff]  ;;  %v772_v25 = vld [vmem:[%s1813_s6 + $0x130] sm:$0xff] }
 0x108   : > { %1195 = vmatprep.subr.mxu0 %v546_v48  ;;  %601 = vmatpush1.msra.mxu1 %v535_v55  ;;  %v770_v22 = vld [vmem:[%s1813_s6 + $0x120] sm:$0xff]  ;;  %v768_v26 = vld [vmem:[%s1813_s6 + $0x110] sm:$0xff]  ;;  %v767_v27 = vld [vmem:[%s1813_s6 + $0x108] sm:$0xff] }
 0x109   : > { %1196 = vmatpush3.msra.mxu0 %v546_v48  ;;  %602 = vmatprep.subr.mxu1 %v533_v56  ;;  %v769_v28 = vld [vmem:[%s1813_s6 + $0x118] sm:$0xff]  ;;  %v764_v30 = vld [vmem:[%s1813_s6 + $0xf0] sm:$0xff]  ;;  %v766_v31 = vld [vmem:[%s1813_s6 + $0x100] sm:$0xff] }
 0x10a   : > { %1197 = vmatprep.subr.mxu0 %v543_v51  ;;  %603 = vmatpush1.msra.mxu1 %v532_v58  ;;  %v765_v29 = vld [vmem:[%s1813_s6 + $0xf8] sm:$0xff]  ;;  %v762_v32 = vld [vmem:[%s1813_s6 + $0xe0] sm:$0xff]  ;;  %v763_v34 = vld [vmem:[%s1813_s6 + $0xe8] sm:$0xff] }
 0x10b   : > { %1198 = vmatpush3.msra.mxu0 %v543_v51  ;;  %604 = vmatprep.subr.mxu1 %v530_v59  ;;  %v761_v33 = vld [vmem:[%s1813_s6 + $0xd8] sm:$0xff]  ;;  %v759_v35 = vld [vmem:[%s1813_s6 + $0xc8] sm:$0xff]  ;;  %v758_v36 = vld [vmem:[%s1813_s6 + $0xc0] sm:$0xff] }
 0x10c   : > { %1199 = vmatprep.subr.mxu0 %v540_v54  ;;  %605 = vmatpush1.msra.mxu1 %v529_v61  ;;  %v760_v37 = vld [vmem:[%s1813_s6 + $0xd0] sm:$0xff]  ;;  %v755_v39 = vld [vmem:[%s1813_s6 + $0xa8] sm:$0xff]  ;;  %v757_v40 = vld [vmem:[%s1813_s6 + $0xb8] sm:$0xff] }
 0x10d   : > { %1200 = vmatpush3.msra.mxu0 %v540_v54  ;;  %606 = vmatprep.subr.mxu1 %v527_v62  ;;  %v756_v38 = vld [vmem:[%s1813_s6 + $0xb0] sm:$0xff]  ;;  %v753_v41 = vld [vmem:[%s1813_s6 + $0x98] sm:$0xff]  ;;  %v754_v43 = vld [vmem:[%s1813_s6 + $0xa0] sm:$0xff] }
 0x10e   : > { %1201 = vmatprep.subr.mxu0 %v537_v57  ;;  %607 = vmatpush1.msra.mxu1 %v526_v0  ;;  %v752_v42 = vld [vmem:[%s1813_s6 + $0x90] sm:$0xff]  ;;  %v750_v44 = vld [vmem:[%s1813_s6 + $0x80] sm:$0xff]  ;;  %v749_v45 = vld [vmem:[%s1813_s6 + $0x78] sm:$0xff]  ;;  %v567_v0 = vlaneseq }
 0x10f   : > { %1202 = vmatpush3.msra.mxu0 %v537_v57  ;;  %608 = vmatprep.subr.mxu1 %v524_v1  ;;  %v751_v46 = vld [vmem:[%s1813_s6 + $0x88] sm:$0xff]  ;;  %v746_v48 = vld [vmem:[%s1813_s6 + $0x60] sm:$0xff]  ;;  %v748_v49 = vld [vmem:[%s1813_s6 + $0x70] sm:$0xff] }
 0x110   : > { %1203 = vmatprep.subr.mxu0 %v534_v60  ;;  %609 = vmatpush1.msra.mxu1 %v523_v3  ;;  %v747_v47 = vld [vmem:[%s1813_s6 + $0x68] sm:$0xff]  ;;  %v744_v50 = vld [vmem:[%s1813_s6 + $0x50] sm:$0xff]  ;;  %v745_v52 = vld [vmem:[%s1813_s6 + $0x58] sm:$0xff] }
 0x111   : > { %1204 = vmatpush3.msra.mxu0 %v534_v60  ;;  %610 = vmatprep.subr.mxu1 %v521_v4  ;;  %v743_v51 = vld [vmem:[%s1813_s6 + $0x48] sm:$0xff]  ;;  %v741_v53 = vld [vmem:[%s1813_s6 + $0x38] sm:$0xff]  ;;  %v740_v54 = vld [vmem:[%s1813_s6 + $0x30] sm:$0xff] }
 0x112   : > { %1205 = vmatprep.subr.mxu0 %v531_v63  ;;  %611 = vmatpush1.msra.mxu1 %v520_v6  ;;  %v742_v55 = vld [vmem:[%s1813_s6 + $0x40] sm:$0xff]  ;;  %v737_v57 = vld [vmem:[%s1813_s6 + $0x18] sm:$0xff]  ;;  %v739_v58 = vld [vmem:[%s1813_s6 + $0x28] sm:$0xff] }
 0x113   : > { %1206 = vmatpush3.msra.mxu0 %v531_v63  ;;  %612 = vmatprep.subr.mxu1 %v518_v7  ;;  %v738_v56 = vld [vmem:[%s1813_s6 + $0x20] sm:$0xff]  ;;  %v735_v59 = vld [vmem:[%s1813_s6 + $0x8] sm:$0xff]  ;;  %v736_v61 = vld [vmem:[%s1813_s6 + $0x10] sm:$0xff] }
 0x114   : > { %1207 = vmatprep.subr.mxu0 %v528_v2  ;;  %613 = vmatpush1.msra.mxu1 %v517_v9  ;;  %v734_v60 = vld [vmem:[%s1813_s6] sm:$0xff] }
 0x115   : > { %1208 = vmatpush3.msra.mxu0 %v528_v2  ;;  %647 = vmatmul.mubr.f32.vlgmr.msra.gmra.mxu1 %v1457_v24  ;;  %v568_v2 = vshrl.u32 %v567_v0, 7  ;;  %v782_v7 = vld [vmem:[%s1814_s7] sm:$0x7] }
 0x116   : > { %1209 = vmatprep.subr.mxu0 %v525_v5  ;;  %799 = vmatprep.subr.mxu1 %v780_v11 }
 0x117   : > { %1210 = vmatpush3.msra.mxu0 %v525_v5  ;;  %1215 = vmatprep.mubr.f32.mxu0 %v1457_v24  ;;  %v569_v4 = vsub.s32 0, %v568_v2  ;;  %v565_v5 = vld [vmem:[%s1812_s5] sm:$0x7]  ;;  %v573_v11 = vsub.s32 1, %v568_v2 }
 0x118   : > { %1211 = vmatprep.subr.mxu0 %v522_v8  ;;  %800 = vmatpush1.msra.mxu1 %v779_v13 }
 0x119   : > { %1212 = vmatpush3.msra.mxu0 %v522_v8  ;;  %801 = vmatprep.subr.mxu1 %v777_v15  ;;  %v570_v8 = vrot.slane %v565_v5, %v569_v4  ;;  %v787_v9 = vrot.slane %v782_v7, %v569_v4  ;;  %v791_v15 = vrot.slane %v782_v7, %v573_v11 }
 0x11a   : > { %1213 = vmatprep.subr.mxu0 %v519_v10  ;;  %802 = vmatpush1.msra.mxu1 %v776_v16 }
 0x11b   : > { %1214 = vmatpush3.msra.mxu0 %v519_v10  ;;  %803 = vmatprep.subr.mxu1 %v774_v18 }
 0x11c   : > { %1218 = vmatprep.subr.mxu0 %v781_v14  ;;  %1216 = vmatmul.mubr.f32.vlgmr.msra.gmra.mxu0 %v1455_v23 }
 0x11d   : > { %1219 = vmatpush3.msra.mxu0 %v781_v14  ;;  %804 = vmatpush1.msra.mxu1 %v773_v19 }
 0x11e   : > { %1220 = vmatprep.subr.mxu0 %v778_v17  ;;  %805 = vmatprep.subr.mxu1 %v771_v21 }
 0x11f   : > { %1221 = vmatpush3.msra.mxu0 %v778_v17  ;;  %806 = vmatpush1.msra.mxu1 %v770_v22  ;;  %v574_v17 = vrot.slane %v565_v5, %v573_v11 }
 0x120   : > { %1222 = vmatprep.subr.mxu0 %v775_v20  ;;  %807 = vmatprep.subr.mxu1 %v768_v26 }
 0x121   : > { %1223 = vmatpush3.msra.mxu0 %v775_v20  ;;  %808 = vmatpush1.msra.mxu1 %v767_v27 }
 0x122   : > { %1224 = vmatprep.subr.mxu0 %v772_v25  ;;  %809 = vmatprep.subr.mxu1 %v765_v29 }
 0x123   : > { %1225 = vmatpush3.msra.mxu0 %v772_v25  ;;  %810 = vmatpush1.msra.mxu1 %v764_v30 }
 0x124   : > { %1226 = vmatprep.subr.mxu0 %v769_v28  ;;  %811 = vmatprep.subr.mxu1 %v762_v32 }
 0x125   : > { %1227 = vmatpush3.msra.mxu0 %v769_v28  ;;  %812 = vmatpush1.msra.mxu1 %v761_v33 }
 0x126   : > { %1228 = vmatprep.subr.mxu0 %v766_v31  ;;  %813 = vmatprep.subr.mxu1 %v759_v35 }
 0x127   : > { %1229 = vmatpush3.msra.mxu0 %v766_v31  ;;  %814 = vmatpush1.msra.mxu1 %v758_v36 }
 0x128   : > { %1230 = vmatprep.subr.mxu0 %v763_v34  ;;  %815 = vmatprep.subr.mxu1 %v756_v38 }
 0x129   : > { %1231 = vmatpush3.msra.mxu0 %v763_v34  ;;  %816 = vmatpush1.msra.mxu1 %v755_v39 }
 0x12a   : > { %1232 = vmatprep.subr.mxu0 %v760_v37  ;;  %817 = vmatprep.subr.mxu1 %v753_v41 }
 0x12b   : > { %1233 = vmatpush3.msra.mxu0 %v760_v37  ;;  %818 = vmatpush1.msra.mxu1 %v752_v42 }
 0x12c   : > { %1234 = vmatprep.subr.mxu0 %v757_v40  ;;  %819 = vmatprep.subr.mxu1 %v750_v44 }
 0x12d   : > { %1235 = vmatpush3.msra.mxu0 %v757_v40  ;;  %820 = vmatpush1.msra.mxu1 %v749_v45 }
 0x12e   : > { %1236 = vmatprep.subr.mxu0 %v754_v43  ;;  %821 = vmatprep.subr.mxu1 %v747_v47 }
 0x12f   : > { %1237 = vmatpush3.msra.mxu0 %v754_v43  ;;  %822 = vmatpush1.msra.mxu1 %v746_v48  ;;  %v577_v43 = vsub.s32 2, %v568_v2 }
 0x130   : > { %1238 = vmatprep.subr.mxu0 %v751_v46  ;;  %823 = vmatprep.subr.mxu1 %v744_v50 }
 0x131   : > { %1239 = vmatpush3.msra.mxu0 %v751_v46  ;;  %652 = vmatprep.mubr.f32.mxu1 %v1322_v12  ;;  %v578_v47 = vrot.slane %v565_v5, %v577_v43  ;;  %v795_v48 = vrot.slane %v782_v7, %v577_v43  ;;  %v1001_v5 = vstv %s1000_s16 }
 0x132   : > { %1240 = vmatprep.subr.mxu0 %v748_v49  ;;  %824 = vmatpush1.msra.mxu1 %v743_v51  ;;  %vm1002_vm2 = vcmp.eq.s32.totalorder %v1001_v5, 1 }
 0x133   : > { %1241 = vmatpush3.msra.mxu0 %v748_v49  ;;  %653 = vmatmul.mubr.f32.gmra.mxu1 %v1455_v23 }
 0x134   : > { %1242 = vmatprep.subr.mxu0 %v745_v52  ;;  %825 = vmatprep.subr.mxu1 %v741_v53 }
 0x135   : > { %1243 = vmatpush3.msra.mxu0 %v745_v52  ;;  %826 = vmatpush1.msra.mxu1 %v740_v54 }
 0x136   : > { %1244 = vmatprep.subr.mxu0 %v742_v55  ;;  %827 = vmatprep.subr.mxu1 %v738_v56 }
 0x137   : > { %1245 = vmatpush3.msra.mxu0 %v742_v55  ;;  %863 = vmatprep.mubr.f32.mxu1 %v1322_v12 }
 0x138   : > { %828 = vmatpush1.msra.mxu1 %v737_v57  ;;  %1246 = vmatprep.subr.mxu0 %v739_v58 }
 0x139   : > { %829 = vmatprep.subr.mxu1 %v735_v59  ;;  %1247 = vmatpush3.msra.mxu0 %v739_v58 }
 0x13a   : > { %830 = vmatpush1.msra.mxu1 %v734_v60  ;;  %1248 = vmatprep.subr.mxu0 %v736_v61 }
 0x13b   : > { %1249 = vmatpush3.msra.mxu0 %v736_v61 }
 0x1bc   : > { %v1762_v62 = vpop.f32.mrf.mxu0 }
 0x1bd   : > { %vm994_vm3 = vcmp.eq.f32.partialorder %v1762_v62, 0.0 }
 0x1be   : > { %v1764_v63 = vpop.f32.mrf.mxu0 }
 0x1bf   : > { %864 = vmatmul.mubr.f32.vlgmr.msra.gmra.mxu1 %v1764_v63  ;;  %1250 = vmatprep.mubr.f32.mxu0 %v1764_v63  ;;  %vm993_vm1 = vcmp.eq.f32.partialorder %v1764_v63, 0.0 }
 0x1c0   : > { %1251 = vmatmul.mubr.f32.vlgmr.msra.gmra.mxu0 %v1762_v62  ;;  %869 = vmatprep.mubr.f32.mxu1 %v1322_v12 }
 0x1c3   : > { %870 = vmatmul.mubr.f32.gmra.mxu1 %v1762_v62 }
 0x1d5   : > { %v648_v1 = vpop.f32.mrf.mxu1 }
 0x1d6   : > { %v649_v13 = vadd.f32 %v648_v1, %v570_v8 }
 0x1d7   : > { %v650_v3 = vpop.f32.mrf.mxu1 }
 0x1d8   : > { %v651_v27 = vadd.f32 %v650_v3, %v574_v17 }
 0x1dc   : > { %v1217_v37 = vpop.f32.mrf.mxu0 }
 0x1dd   : > { %v731_v58 = vadd.f32 %v1217_v37, %v578_v47 }
 0x1de   : > { %v725_v40 = vpop.f32.mrf.mxu0 }
 0x1df   : > { %v726_v53 = vadd.f32 %v725_v40, %v578_v47 }
 0x1f3   : > { %v654_v6 = vpop.f32.mrf.mxu1 }
 0x1f4   : > { %v655_v20 = vadd.f32 %v654_v6, %v570_v8 }
 0x1f5   : > { %v656_v10 = vpop.f32.mrf.mxu1 }
 0x1f6   : > { %v657_v32 = vadd.f32 %v656_v10, %v574_v17 }
 0x27f   : > { %v865_v12 = vpop.f32.mrf.mxu1 }
 0x280   : > { %v866_v14 = vadd.f32 %v865_v12, %v787_v9  ;;  %v1252_v42 = vpop.f32.mrf.mxu0 }
 0x281   : > { %v867_v16 = vpop.f32.mrf.mxu1  ;;  %v948_v55 = vadd.f32 %v1252_v42, %v795_v48 }
 0x282   : > { %v951_v18 = vadd.f32 %v866_v14, %v649_v13  ;;  %v868_v22 = vadd.f32 %v867_v16, %v791_v15  ;;  %v942_v45 = vpop.f32.mrf.mxu0 }
 0x283   : > { %v871_v19 = vpop.f32.mrf.mxu1  ;;  %v943_v50 = vadd.f32 %v942_v45, %v795_v48 }
 0x284   : > { %v1073_v21 = vmul.f32 -1.442695, %v951_v18  ;;  %v872_v25 = vadd.f32 %v871_v19, %v787_v9  ;;  %v965_v30 = vadd.f32 %v868_v22, %v651_v27 }
 0x285   : > { %v873_v26 = vpop.f32.mrf.mxu1 }
 0x286   : > { %1278 = vpow2.f32 %v1073_v21  ;;  %v952_v28 = vadd.f32 %v872_v25, %v655_v20  ;;  %v874_v29 = vadd.f32 %v873_v26, %v791_v15  ;;  %v1075_v34 = vmul.f32 -1.442695, %v965_v30 }
 0x288   : > { %v1074_v31 = vmul.f32 -1.442695, %v952_v28  ;;  %v966_v33 = vadd.f32 %v874_v29, %v657_v32 }
 0x28a   : > { %1280 = vpow2.f32 %v1074_v31  ;;  %v1076_v35 = vmul.f32 -1.442695, %v966_v33 }
 0x28b   : > { %1282 = vpow2.f32 %v1075_v34 }
 0x28c   : > { %1284 = vpow2.f32 %v1076_v35 }
 0x293   : > { %v1279_v36 = vpop.eup %1278 }
 0x294   : > { %v959_v38 = vadd.f32 1.0, %v1279_v36 }
 0x296   : > { %1286 = vrcp.f32 %v959_v38 }
 0x297   : > { %v1281_v39 = vpop.eup %1280 }
 0x298   : > { %v960_v41 = vadd.f32 1.0, %v1281_v39  ;;  %v1283_v44 = vpop.eup %1282 }
 0x299   : > { %v1285_v46 = vpop.eup %1284  ;;  %v973_v49 = vadd.f32 1.0, %v1283_v44 }
 0x29a   : > { %1288 = vrcp.f32 %v960_v41  ;;  %v974_v52 = vadd.f32 1.0, %v1285_v46 }
 0x29b   : > { %1290 = vrcp.f32 %v973_v49 }
 0x29c   : > { %1292 = vrcp.f32 %v974_v52 }
 0x2a3   : > { %v1287_v51 = vpop.eup %1286 }
 0x2a4   : > { %v979_v54 = vmul.f32 %v1287_v51, %v943_v50 }
 0x2a6   : > { %v981_v56 = vadd.f32 %v979_v54, %v726_v53 }
 0x2a7   : > { %v1289_v57 = vpop.eup %1288 }
 0x2a8   : > { %1294 = vtanh.f32 %v981_v56  ;;  %v980_v59 = vmul.f32 %v1289_v57, %v948_v55  ;;  %v1291_v61 = vpop.eup %1290 }
 0x2a9   : > { %v1293_v0 = vpop.eup %1292  ;;  %v985_v1 = vsub.f32 1.0, %v1291_v61  ;;  %v989_v3 = vmul.f32 %v1291_v61, %v1764_v63 }
 0x2aa   : > { %v982_v60 = vadd.f32 %v980_v59, %v731_v58  ;;  %v986_v7 = vsub.f32 1.0, %v1293_v0  ;;  %v990_v11 = vmul.f32 %v1293_v0, %v1762_v62 }
 0x2ac   : > { %1296 = vtanh.f32 %v982_v60 }
 0x2b5   : > { %v1295_v2 = vpop.eup %1294 }
 0x2b6   : > { %v987_v4 = vmul.f32 %v1295_v2, %v985_v1 }
 0x2b8   : > { %v991_v6 = vadd.f32 %v989_v3, %v987_v4 }
 0x2b9   : > { %v1297_v8 = vpop.eup %1296 }
 0x2ba   : > { %v995_v9 = vsel %vm993_vm1, %v1457_v24, %v991_v6  ;;  %v988_v10 = vmul.f32 %v1297_v8, %v986_v7 }
 0x2bb   : > { %v998_v12 = vmax.f32 %v995_v9, 0.0 }
 0x2bc   : > { %v992_v13 = vadd.f32 %v990_v11, %v988_v10 }
 0x2bd   : > { %v1003_v14 = vsel %vm1002_vm2, %v998_v12, %v995_v9 }
 0x2be   : > { %1006 = vst [vmem:[%s1815_s8] sm:$0xff] %v1003_v14  ;;  %v996_v15 = vsel %vm994_vm3, %v1455_v23, %v992_v13  ;;  %1012 = sbr.rel (!%p310_p4) target bundleno = 715 (0x2cb), region = 60 }
 0x2bf   : > { %v999_v16 = vmax.f32 %v996_v15, 0.0 }
 0x2c1   : > { %v1004_v17 = vsel %vm1002_vm2, %v999_v16, %v996_v15 }
 0x2c2   : > { %1007 = vst [vmem:[%s1815_s8 + $0x8] sm:$0xff] %v1004_v17 }
 0x2c5   : > { %v1013_v24 = vld [vmem:[%s1815_s8] sm:$0xff] }
 0x2c6   : > { %1015 = vst [vmem:[#allocation2] sm:$0xff] %v1013_v24 }
 0x2c9   : > { %v1014_v62 = vld [vmem:[%s1815_s8 + $0x8] sm:$0xff] }
 0x2ca   : > { %1016 = vst [vmem:[#allocation2 + $0x8] sm:$0xff] %v1014_v62 }
 0x2cb PF: > { %s18_s29 = sadd.s32 1, %s1320_s29   ;;  %s1816_s27 = smov %s1316_s28 }
 0x2cc   : > { %p15_p7 = scmp.ge.s32.totalorder %s18_s29, 4   ;;  %s1817_s28 = smov %s1819_s30 }
 0x2ce   :  { %17 = sbr.rel (!%p15_p7) target bundleno = 2 (0x2), region = 88 }

</bundles_post_ra>
